<compile_context>
chip_gen: v6e
topology: v6e:2x2x1
jax: 0.10.0
libtpu: 0.0.40
codegen_flags: <defaults>
</compile_context>

<pallas_src>
import functools

import jax
import jax.numpy as jnp
from jax.experimental import pallas as pl
from jax.experimental.pallas import tpu as pltpu

_NEG_LOGIT = -1e9       # sigmoid(_NEG_LOGIT) == 0.0 exactly in f32/bf16
_VPU_MAX_M = 16         # at or below this node count, skip the MXU entirely


def _nil_kernel(y_ref, a_ref, out_ref, carry_ref, *, n_real_nodes):
    """One (b_blk graphs) x (one T tile) step of the regularizer."""
    b_blk, m_pad, t_tile = y_ref.shape
    tt = pl.program_id(1)

    @pl.when(tt == 0)
    def _():
        out_ref[...] = jnp.zeros_like(out_ref)

    # Sigmoid in f32 (v5e has no bf16 EUP/VPU).
    y = jax.nn.sigmoid(y_ref[...].astype(jnp.float32))            # (B, m, Tt)

    if m_pad <= _VPU_MAX_M:
        # m << MXU dim (128/256): a batched (m x m)@(m x Tt) matmul wastes
        # >99% of every MXU pass, so form A @ y as an unrolled VPU sum over
        # the real node columns (padded columns are all zero anyway).
        a = a_ref[...].astype(jnp.float32)                        # (B, m, m)
        ay = a[:, :, 0:1] * y[:, 0:1, :]
        for j in range(1, n_real_nodes):
            ay = ay + a[:, :, j:j + 1] * y[:, j:j + 1, :]
    else:
        # Exact f32 batched matmul (y operand kept f32 per review).
        # TODO(synk): for 16 < m << 128/256 fold several graphs into one
        # block-diagonal (f*m, f*m) LHS per MXU pass to remove K/N padding.
        ay = jax.lax.dot_general(
            a_ref[...].astype(jnp.float32), y,
            dimension_numbers=(((2,), (1,)), ((0,), (0,))),
            preferred_element_type=jnp.float32)                   # (B, m, Tt)

    # (B, m, Tt) -> (B*m, Tt): the wrapper pads m to a multiple of 8, so this
    # merge of the leading/sublane dims is a free re-layout for every m.
    y2 = y.reshape(b_blk * m_pad, t_tile)
    ay2 = ay.reshape(b_blk * m_pad, t_tile)

    # diff[:, t] = y[:, t] - ay[:, t-1]: XLU lane rotate; column 0 comes from
    # the previous T tile's carry (stale at tt == 0, but masked below).
    ay_shift = pltpu.roll(ay2, shift=1, axis=1)
    t_loc = jax.lax.broadcasted_iota(jnp.int32, (b_blk * m_pad, t_tile), 1)
    ay_shift = jnp.where(t_loc == 0, carry_ref[...], ay_shift)
    carry_ref[...] = ay2[:, t_tile - 1:t_tile]                    # next tile's t-1

    t_glob = t_loc + tt * t_tile                                  # global timestep
    contrib = jnp.where(t_glob >= 1, jnp.maximum(y2 - ay_shift, 0.0), 0.0)

    # Scalar partial per graph block, accumulated across T tiles; the wrapper
    # finishes the reduction over blocks.
    out_ref[...] += jnp.broadcast_to(jnp.sum(contrib), (1, 1, 1))


def _round_up(x, mult):
    return -(-x // mult) * mult


def _vmem_budget_and_limit():
    """Generation-aware (per-step working-set budget, scoped-VMEM limit)."""
    try:
        phys = int(pltpu.get_tpu_info().vmem_capacity_bytes)
    except Exception:
        phys = 64 * 1024 * 1024         # assume the smallest (v7x per-TC) VMEM
    budget = min(max(phys // 3, 16 * 1024 * 1024), 48 * 1024 * 1024)
    limit = min(phys * 3 // 4, 100 * 1024 * 1024)
    return budget, limit


def _pick_block_bs(m_pad, t_tile, logit_bytes, budget_bytes):
    """Largest per-step graph count whose working set fits the VMEM budget.

    Shapes are rounded up to their (sublane, lane) tiles, and all in-kernel
    f32/i32 temporaries (y, ay, ay_shift, contrib, iotas, A cast) are charged.
    """
    m_lane = _round_up(m_pad, 128)
    t_lane = _round_up(t_tile, 128)
    y_in = 2 * m_pad * t_lane * logit_bytes              # double-buffered logits block
    a_in = 2 * _round_up(m_pad, 32) * m_lane             # double-buffered int8 A block
    tmp = 6 * m_pad * t_lane * 4 + m_pad * m_lane * 4    # f32/i32 temporaries + A cast
    carry = m_pad * 128 * 4                              # per-graph slice of the carry
    per_graph = y_in + a_in + tmp + carry
    return max(1, budget_bytes // per_graph)


def nil_with_logits_reg(logits, A_coo, *, num_nodes, t_tile=None):
    """Forward of NILWithLogitsReg.  logits: (bs*m, T); A_coo: ints, (bs, 2, E)."""
    m = num_nodes
    bs = logits.shape[0] // m
    T = logits.shape[-1]

    # Dense per-graph adjacency exactly like COO_to_matrix (+ eye, so the
    # diagonal can reach 2).  Built/stored as int8 ({0,1,2} exact): 4x less A
    # DMA than f32; the kernel casts it while the load is hidden by compute.
    # TODO(synk): for large sparse graphs (E << m^2) move to a scalar-prefetched
    # edge-list / segment-sum path and drop the dense O(bs*m^2) A entirely.
    edges = A_coo.reshape(bs, 2, -1) % m

    def one_adj(e):
        adj = jnp.zeros((m, m), jnp.int8).at[e[0], e[1]].set(1)
        return adj + jnp.eye(m, dtype=jnp.int8)

    A = jax.vmap(one_adj)(edges)                         # (bs, m, m) int8
    y = logits.reshape(bs, m, T)                         # native dtype, no upcast

    # ---- static padding / tiling decisions ----
    m_pad = _round_up(m, 8)                              # free sublane merge in-kernel

    if t_tile is None:
        t_tile = T if T <= 512 else 512
    if t_tile >= T:
        t_tile, n_tt = T, 1
    else:
        t_tile = max(128, (t_tile // 128) * 128)         # lane-aligned T tiles
        if t_tile >= T:
            t_tile, n_tt = T, 1
        else:
            n_tt = pl.cdiv(T, t_tile)
    T_pad = n_tt * t_tile

    budget, vmem_limit = _vmem_budget_and_limit()
    b_blk = _pick_block_bs(m_pad, t_tile, logits.dtype.itemsize, budget)
    if bs >= 2:
        b_blk = min(b_blk, (bs + 1) // 2)    # nblk >= 2 so both v7x TCs get work
    b_blk = max(1, min(b_blk, bs))
    nblk = pl.cdiv(bs, b_blk)
    b_blk = pl.cdiv(bs, nblk)                # re-balance to minimize padding
    bs_pad = nblk * b_blk

    # Padded graphs / nodes / timesteps contribute exactly 0:
    # sigmoid(-1e9) == 0 and the padded adjacency is zero, so relu(0 - x>=0)=0.
    if (bs_pad, m_pad, T_pad) != (bs, m, T):
        y = jnp.pad(y, ((0, bs_pad - bs), (0, m_pad - m), (0, T_pad - T)),
                    constant_values=_NEG_LOGIT)
        A = jnp.pad(A, ((0, bs_pad - bs), (0, m_pad - m), (0, m_pad - m)))

    kernel = functools.partial(_nil_kernel, n_real_nodes=m)
    partials = pl.pallas_call(
        kernel,
        out_shape=jax.ShapeDtypeStruct((nblk, 1, 1), jnp.float32),
        grid=(nblk, n_tt),
        in_specs=[
            # TODO(synk): consider pipeline_mode=pl.Buffered(3) here on v7x if
            # profiling shows exposed DMA between grid steps.
            pl.BlockSpec((b_blk, m_pad, t_tile), lambda b, t: (b, 0, t)),
            pl.BlockSpec((b_blk, m_pad, m_pad), lambda b, t: (b, 0, 0)),
        ],
        out_specs=pl.BlockSpec((1, 1, 1), lambda b, t: (b, 0, 0)),
        scratch_shapes=[pltpu.VMEM((b_blk * m_pad, 1), jnp.float32)],
        compiler_params=pltpu.CompilerParams(
            dimension_semantics=("parallel", "arbitrary"),
            vmem_limit_bytes=int(vmem_limit)),
    )(y, A)
    return jnp.sum(partials)


def _reference(logits, A_coo, num_nodes):
    """Plain-JAX f32 replica of the PyTorch forward for validation."""
    m = num_nodes
    bs = logits.shape[0] // m
    y = jax.nn.sigmoid(logits.astype(jnp.float32))
    edges = A_coo.reshape(bs, 2, -1) % m
    blocks = []
    for b in range(bs):
        adj = jnp.zeros((m, m), jnp.float32).at[edges[b, 0], edges[b, 1]].set(1.0)
        blocks.append(adj + jnp.eye(m, dtype=jnp.float32))
    A_full = jax.scipy.linalg.block_diag(*blocks)
    ay = jnp.matmul(A_full, y, precision=jax.lax.Precision.HIGHEST)
    return jnp.sum(jnp.maximum(y[:, 1:] - ay[:, :-1], 0.0))


if __name__ == "__main__":
    root = jax.random.PRNGKey(0)

    def run_case(case_idx, bs, m, T, E, **kw):
        k1, k2 = jax.random.split(jax.random.fold_in(root, case_idx))
        logits = jax.random.normal(k1, (bs * m, T), dtype=jnp.float32)
        A_coo = jax.random.randint(k2, (bs, 2, E), 0, bs * m, dtype=jnp.int32)
        fn = jax.jit(functools.partial(nil_with_logits_reg, num_nodes=m, **kw))
        out = fn(logits, A_coo)
        jax.block_until_ready(out)
        ref = _reference(logits, A_coo, m)
        assert jnp.allclose(out, ref, rtol=1e-3, atol=1e-3), (bs, m, T, out, ref)

    # Small default problem (single T tile, VPU A@y path, no padding).
    run_case(0, bs=2, m=8, T=16, E=12)
    # Exercises batch padding (bs 3 -> 4), node padding (m 6 -> 8) and the
    # T-tiling carry column across three 128-wide T tiles.
    run_case(1, bs=3, m=6, T=300, E=10, t_tile=128)

    print("KERNEL_OK")
</pallas_src>

<mosaic_0001>
module attributes {stable_mosaic.version = 11 : i64} {
  func.func @_nil_kernel(%arg0: i32, %arg1: i32, %arg2: memref<1x8x16xf32, #tpu.memory_space<vmem>>, %arg3: memref<1x8x8xi8, #tpu.memory_space<vmem>>, %arg4: memref<1x1x1xf32, #tpu.memory_space<vmem>>, %arg5: memref<8x1xf32, #tpu.memory_space<vmem>>) attributes {dimension_semantics = [#tpu.dimension_semantics<parallel>, #tpu.dimension_semantics<arbitrary>], iteration_bounds = array<i64: 2, 1>, scalar_prefetch = 0 : i64, scratch_operands = 1 : i64, tpu.core_type = #tpu.core_type<tc>, window_params = [{transform_indices = @transform_0, window_bounds = array<i64: 1, 8, 16>}, {transform_indices = @transform_1, window_bounds = array<i64: 1, 8, 8>}, {transform_indices = @transform_2, window_bounds = array<i64: 1, 1, 1>}]} {
    %c0_i32 = arith.constant 0 : i32
    %0 = arith.cmpi eq, %arg1, %c0_i32 : i32
    %1 = arith.extui %0 : i1 to i32
    %c0_i32_0 = arith.constant 0 : i32
    %2 = arith.cmpi ne, %1, %c0_i32_0 : i32
    scf.if %2 {
      %cst_21 = arith.constant 0.000000e+00 : f32
      %88 = vector.broadcast %cst_21 : f32 to vector<1x1x1xf32>
      %c0_22 = arith.constant 0 : index
      %c0_23 = arith.constant 0 : index
      %c0_24 = arith.constant 0 : index
      %89 = vector.load %arg4[%c0_22, %c0_23, %c0_24] : memref<1x1x1xf32, #tpu.memory_space<vmem>>, vector<1x1x1xf32>
      tpu.vector_store %arg4[%c0_22, %c0_23, %c0_24], %88 {strides = array<i32>} : memref<1x1x1xf32, #tpu.memory_space<vmem>>, vector<1x1x1xf32>,
    } else {
    }
    %c0 = arith.constant 0 : index
    %c0_1 = arith.constant 0 : index
    %c0_2 = arith.constant 0 : index
    %3 = vector.load %arg2[%c0, %c0_1, %c0_2] : memref<1x8x16xf32, #tpu.memory_space<vmem>>, vector<1x8x16xf32>
    %4 = arith.negf %3 : vector<1x8x16xf32>
    %5 = math.exp %4 : vector<1x8x16xf32>
    %cst = arith.constant 1.000000e+00 : f32
    %6 = vector.broadcast %cst : f32 to vector<1x8x16xf32>
    %7 = arith.addf %6, %5 : vector<1x8x16xf32>
    %8 = arith.divf %6, %7 : vector<1x8x16xf32>
    %c0_3 = arith.constant 0 : index
    %c0_4 = arith.constant 0 : index
    %c0_5 = arith.constant 0 : index
    %9 = vector.load %arg3[%c0_3, %c0_4, %c0_5] : memref<1x8x8xi8, #tpu.memory_space<vmem>>, vector<1x8x8xi8>
    %10 = arith.sitofp %9 : vector<1x8x8xi8> to vector<1x8x8xf32>
    %11 = vector.extract_strided_slice %10 {offsets = [0, 0, 0], sizes = [1, 8, 1], strides = [1, 1, 1]} : vector<1x8x8xf32> to vector<1x8x1xf32>
    %12 = vector.extract_strided_slice %8 {offsets = [0, 0, 0], sizes = [1, 1, 16], strides = [1, 1, 1]} : vector<1x8x16xf32> to vector<1x1x16xf32>
    %13 = vector.broadcast %11 : vector<1x8x1xf32> to vector<1x8x16xf32>
    %14 = vector.broadcast %12 : vector<1x1x16xf32> to vector<1x8x16xf32>
    %15 = arith.mulf %13, %14 : vector<1x8x16xf32>
    %16 = vector.extract_strided_slice %10 {offsets = [0, 0, 1], sizes = [1, 8, 1], strides = [1, 1, 1]} : vector<1x8x8xf32> to vector<1x8x1xf32>
    %17 = vector.extract_strided_slice %8 {offsets = [0, 1, 0], sizes = [1, 1, 16], strides = [1, 1, 1]} : vector<1x8x16xf32> to vector<1x1x16xf32>
    %18 = vector.broadcast %16 : vector<1x8x1xf32> to vector<1x8x16xf32>
    %19 = vector.broadcast %17 : vector<1x1x16xf32> to vector<1x8x16xf32>
    %20 = arith.mulf %18, %19 : vector<1x8x16xf32>
    %21 = arith.addf %15, %20 : vector<1x8x16xf32>
    %22 = vector.extract_strided_slice %10 {offsets = [0, 0, 2], sizes = [1, 8, 1], strides = [1, 1, 1]} : vector<1x8x8xf32> to vector<1x8x1xf32>
    %23 = vector.extract_strided_slice %8 {offsets = [0, 2, 0], sizes = [1, 1, 16], strides = [1, 1, 1]} : vector<1x8x16xf32> to vector<1x1x16xf32>
    %24 = vector.broadcast %22 : vector<1x8x1xf32> to vector<1x8x16xf32>
    %25 = vector.broadcast %23 : vector<1x1x16xf32> to vector<1x8x16xf32>
    %26 = arith.mulf %24, %25 : vector<1x8x16xf32>
    %27 = arith.addf %21, %26 : vector<1x8x16xf32>
    %28 = vector.extract_strided_slice %10 {offsets = [0, 0, 3], sizes = [1, 8, 1], strides = [1, 1, 1]} : vector<1x8x8xf32> to vector<1x8x1xf32>
    %29 = vector.extract_strided_slice %8 {offsets = [0, 3, 0], sizes = [1, 1, 16], strides = [1, 1, 1]} : vector<1x8x16xf32> to vector<1x1x16xf32>
    %30 = vector.broadcast %28 : vector<1x8x1xf32> to vector<1x8x16xf32>
    %31 = vector.broadcast %29 : vector<1x1x16xf32> to vector<1x8x16xf32>
    %32 = arith.mulf %30, %31 : vector<1x8x16xf32>
    %33 = arith.addf %27, %32 : vector<1x8x16xf32>
    %34 = vector.extract_strided_slice %10 {offsets = [0, 0, 4], sizes = [1, 8, 1], strides = [1, 1, 1]} : vector<1x8x8xf32> to vector<1x8x1xf32>
    %35 = vector.extract_strided_slice %8 {offsets = [0, 4, 0], sizes = [1, 1, 16], strides = [1, 1, 1]} : vector<1x8x16xf32> to vector<1x1x16xf32>
    %36 = vector.broadcast %34 : vector<1x8x1xf32> to vector<1x8x16xf32>
    %37 = vector.broadcast %35 : vector<1x1x16xf32> to vector<1x8x16xf32>
    %38 = arith.mulf %36, %37 : vector<1x8x16xf32>
    %39 = arith.addf %33, %38 : vector<1x8x16xf32>
    %40 = vector.extract_strided_slice %10 {offsets = [0, 0, 5], sizes = [1, 8, 1], strides = [1, 1, 1]} : vector<1x8x8xf32> to vector<1x8x1xf32>
    %41 = vector.extract_strided_slice %8 {offsets = [0, 5, 0], sizes = [1, 1, 16], strides = [1, 1, 1]} : vector<1x8x16xf32> to vector<1x1x16xf32>
    %42 = vector.broadcast %40 : vector<1x8x1xf32> to vector<1x8x16xf32>
    %43 = vector.broadcast %41 : vector<1x1x16xf32> to vector<1x8x16xf32>
    %44 = arith.mulf %42, %43 : vector<1x8x16xf32>
    %45 = arith.addf %39, %44 : vector<1x8x16xf32>
    %46 = vector.extract_strided_slice %10 {offsets = [0, 0, 6], sizes = [1, 8, 1], strides = [1, 1, 1]} : vector<1x8x8xf32> to vector<1x8x1xf32>
    %47 = vector.extract_strided_slice %8 {offsets = [0, 6, 0], sizes = [1, 1, 16], strides = [1, 1, 1]} : vector<1x8x16xf32> to vector<1x1x16xf32>
    %48 = vector.broadcast %46 : vector<1x8x1xf32> to vector<1x8x16xf32>
    %49 = vector.broadcast %47 : vector<1x1x16xf32> to vector<1x8x16xf32>
    %50 = arith.mulf %48, %49 : vector<1x8x16xf32>
    %51 = arith.addf %45, %50 : vector<1x8x16xf32>
    %52 = vector.extract_strided_slice %10 {offsets = [0, 0, 7], sizes = [1, 8, 1], strides = [1, 1, 1]} : vector<1x8x8xf32> to vector<1x8x1xf32>
    %53 = vector.extract_strided_slice %8 {offsets = [0, 7, 0], sizes = [1, 1, 16], strides = [1, 1, 1]} : vector<1x8x16xf32> to vector<1x1x16xf32>
    %54 = vector.broadcast %52 : vector<1x8x1xf32> to vector<1x8x16xf32>
    %55 = vector.broadcast %53 : vector<1x1x16xf32> to vector<1x8x16xf32>
    %56 = arith.mulf %54, %55 : vector<1x8x16xf32>
    %57 = arith.addf %51, %56 : vector<1x8x16xf32>
    %58 = vector.shape_cast %8 : vector<1x8x16xf32> to vector<8x16xf32>
    %59 = vector.shape_cast %57 : vector<1x8x16xf32> to vector<8x16xf32>
    %c1_i32 = arith.constant 1 : i32
    %60 = tpu.dynamic_rotate %59 by %c1_i32 dim 1 : vector<8x16xf32>, i32 -> vector<8x16xf32>
    %61 = tpu.iota {dimensions = array<i32: 1>} : vector<8x16xi32>
    %c0_i32_6 = arith.constant 0 : i32
    %62 = vector.broadcast %c0_i32_6 : i32 to vector<8x16xi32>
    %63 = arith.cmpi eq, %61, %62 : vector<8x16xi32>
    %c0_7 = arith.constant 0 : index
    %c0_8 = arith.constant 0 : index
    %64 = vector.load %arg5[%c0_7, %c0_8] : memref<8x1xf32, #tpu.memory_space<vmem>>, vector<8x1xf32>
    %65 = vector.shape_cast %64 : vector<8x1xf32> to vector<8x1xf32>
    %66 = vector.broadcast %65 : vector<8x1xf32> to vector<8x16xf32>
    %67 = arith.select %63, %66, %60 : vector<8x16xi1>, vector<8x16xf32>
    %68 = vector.extract_strided_slice %59 {offsets = [0, 15], sizes = [8, 1], strides = [1, 1]} : vector<8x16xf32> to vector<8x1xf32>
    %c0_9 = arith.constant 0 : index
    %c0_10 = arith.constant 0 : index
    %69 = vector.load %arg5[%c0_9, %c0_10] : memref<8x1xf32, #tpu.memory_space<vmem>>, vector<8x1xf32>
    tpu.vector_store %arg5[%c0_9, %c0_10], %68 {strides = array<i32>} : memref<8x1xf32, #tpu.memory_space<vmem>>, vector<8x1xf32>,
    %c16_i32 = arith.constant 16 : i32
    %70 = arith.muli %arg1, %c16_i32 : i32
    %71 = vector.broadcast %70 : i32 to vector<8x16xi32>
    %72 = arith.addi %61, %71 : vector<8x16xi32>
    %c1_i32_11 = arith.constant 1 : i32
    %73 = vector.broadcast %c1_i32_11 : i32 to vector<8x16xi32>
    %74 = arith.cmpi sge, %72, %73 : vector<8x16xi32>
    %75 = arith.subf %58, %67 : vector<8x16xf32>
    %cst_12 = arith.constant 0.000000e+00 : f32
    %76 = vector.broadcast %cst_12 : f32 to vector<8x16xf32>
    %77 = arith.maximumf %75, %76 : vector<8x16xf32>
    %cst_13 = arith.constant 0.000000e+00 : f32
    %78 = vector.broadcast %cst_13 : f32 to vector<8x16xf32>
    %79 = arith.select %74, %77, %78 : vector<8x16xi1>, vector<8x16xf32>
    %c0_14 = arith.constant 0 : index
    %c0_15 = arith.constant 0 : index
    %c0_16 = arith.constant 0 : index
    %80 = vector.load %arg4[%c0_14, %c0_15, %c0_16] : memref<1x1x1xf32, #tpu.memory_space<vmem>>, vector<1x1x1xf32>
    %81 = vector.shape_cast %79 : vector<8x16xf32> to vector<1x8x16xf32>
    %cst_17 = arith.constant dense<0.000000e+00> : vector<1xf32>
    %82 = vector.multi_reduction <add>, %81, %cst_17 [1, 2] : vector<1x8x16xf32> to vector<1xf32>
    %83 = vector.shape_cast %82 : vector<1xf32> to vector<1x1x1xf32>
    %84 = vector.extract %83[0, 0, 0] : f32 from vector<1x1x1xf32>
    %85 = vector.broadcast %84 : f32 to vector<1x1x1xf32>
    %86 = arith.addf %80, %85 : vector<1x1x1xf32>
    %c0_18 = arith.constant 0 : index
    %c0_19 = arith.constant 0 : index
    %c0_20 = arith.constant 0 : index
    %87 = vector.load %arg4[%c0_18, %c0_19, %c0_20] : memref<1x1x1xf32, #tpu.memory_space<vmem>>, vector<1x1x1xf32>
    tpu.vector_store %arg4[%c0_18, %c0_19, %c0_20], %86 {strides = array<i32>} : memref<1x1x1xf32, #tpu.memory_space<vmem>>, vector<1x1x1xf32>,
    return
  }
  func.func @transform_0(%arg0: i32, %arg1: i32) -> (i32, i32, i32) {
    %c0_i32 = arith.constant 0 : i32
    %c0_i32_0 = arith.constant 0 : i32
    return %arg0, %c0_i32, %arg1 : i32, i32, i32
  }
  func.func @transform_1(%arg0: i32, %arg1: i32) -> (i32, i32, i32) {
    %c0_i32 = arith.constant 0 : i32
    %c0_i32_0 = arith.constant 0 : i32
    %c0_i32_1 = arith.constant 0 : i32
    return %arg0, %c0_i32, %c0_i32_0 : i32, i32, i32
  }
  func.func @transform_2(%arg0: i32, %arg1: i32) -> (i32, i32, i32) {
    %c0_i32 = arith.constant 0 : i32
    %c0_i32_0 = arith.constant 0 : i32
    %c0_i32_1 = arith.constant 0 : i32
    return %arg0, %c0_i32, %c0_i32_0 : i32, i32, i32
  }
}

</mosaic_0001>

<bundles_post_ra>
// kernel: nil_with_logits_reg.1
= control target key start
LH: loop header
LB: loop body
LE: loop exit
PB: predicated region body
PF: predicated region fallthrough
CT: control target
= control target key end

     0   :  { %s503_s9 = smov 0   ;;  %s505_s10 = smov 0   ;;  %s544_s0 = inlined_call_operand.vmem [shape: f32[2,8,16], index: 0, kind: input, shape index: {}]   ;;  %s545_s1 = inlined_call_operand.vmem [shape: s8[2,8,8], index: 1, kind: input, shape index: {}]   ;;  %s546_s2 = inlined_call_operand.vmem [shape: f32[2,1,1], index: 2, kind: output, shape index: {}]  }
   0x1   :  { %s507_s11 = smov 0  }
   0x2 LB: > { %s24_s12 = sadd.s32 1, %s471_s10  ;;  %p397_p0 = scmp.ge.s32.totalorder %s475_s11, 1  ;;  %s475_s11 = sphi %s507_s11, %s12_s11   ;;  %s471_s10 = sphi %s505_s10, %s548_s10   ;;  %s467_s9 = sphi %s503_s9, %s547_s9  }
   0x3   : > { %p26_p1 = scmp.ge.s32.totalorder %s24_s12, 2  ;;  %p137_p2 = scmp.lt.s32.totalorder %s475_s11, 3 }
   0x5   : > { %s550_s12 = smov (%p26_p1, %s24_s12), 0  ;;  %p138_p3 = pnand %p397_p0, %p137_p2 }
   0x6   : > { %p163_p4 = scmp.lt.s32.totalorder (!%p138_p3), %s467_s9, 1  ;;  %s485_s21 = smov (!%p138_p3), 16  }
   0x7   : > { %141 = sbr.rel (%p138_p3) target bundleno = 726 (0x2d6), region = 28  ;;  %s486_s22 = smov (!%p138_p3), 113  }
   0xc   : > { %v477_v0 = vmov 2   ;;  %v478_v1 = vmov 0   ;;  %s552_s9 = smov (!%p163_p4, %s467_s9), 1  ;;  %v479_v5 = vmov 3   ;;  %v480_v6 = vmov 1   ;;  %v283_v57 = vld [vmem:[#allocation2] sm:$0xff] }
   0xd   : > { %442 = vset.pattern.permute.xlu1 %v477_v0  ;;  %440 = vset.pattern.permute.xlu0 %v478_v1  ;;  %s399_s13 = sshll.u32 %s552_s9, 1  ;;  %v481_v7 = vmov 4   ;;  %v482_v8 = vmov 5   ;;  %v483_v9 = vmov 6   ;;  %v484_v10 = vmov 7   ;;  %s398_s17 = sshll.u32 %s552_s9, 3 }
   0xe   : > { %s173_s16 = scalar_lea.vmem %s545_s1, %s399_s13  ;;  %s169_s20 = scalar_lea.vmem %s544_s0, %s398_s17  ;;  %v198_v15 = vlaneseq  ;;  %vm273_vm0 = vcmask 1047680   ;;  %vm298_vm1 = vcmask 7168   ;;  %vm308_vm4 = vcmask 130048  }
   0xf   : > { %v190_v2 = vld [vmem:[%s173_s16] sm:$0x3]  ;;  %s176_s25 = scalar_lea.vmem %s546_s2, %s552_s9  ;;  %vm181_vm5 = vcmask 0  }
  0x10   : > { %v191_v3 = vunpack.c.0.s8 %v190_v2  ;;  %v183_v11 = vld [vmem:[%s169_s20] sm:$0xff]  ;;  %v199_v16 = vshrl.u32 %v198_v15, 7  ;;  %v281_v0 = vand.u32 127, %v198_v15 }
  0x11   : > { %v400_v12 = vmul.f32 -1.442695, %v183_v11 }
  0x12   : > { %v192_v4 = vcvt.s32.f32 %v191_v3  ;;  %v200_v17 = vsub.s32 0, %v199_v16  ;;  %v209_v18 = vsub.s32 1, %v199_v16  ;;  %v219_v19 = vsub.s32 2, %v199_v16 }
  0x13   : > { %449 = vpow2.f32 %v400_v12  ;;  %v229_v24 = vsub.s32 3, %v199_v16  ;;  %v239_v26 = vsub.s32 4, %v199_v16  ;;  %v249_v30 = vsub.s32 5, %v199_v16 }
  0x14   : > { %214 = vperm.xlu1 %442, %v192_v4   ;;  %195 = vperm.xlu0 %440, %v192_v4   ;;  %v259_v38 = vsub.s32 6, %v199_v16  ;;  %v269_v47 = vsub.s32 7, %v199_v16  ;;  %vm282_vm2 = vcmp.eq.s32.totalorder %v281_v0, 0  ;;  %vm303_vm3 = vcmp.ge.s32.totalorder %v281_v0, 1 }
  0x18   : > { %443 = vset.pattern.permute.xlu1 %v479_v5  ;;  %441 = vset.pattern.permute.xlu0 %v480_v6 }
  0x19   : > { %224 = vperm.xlu1 %443, %v192_v4   ;;  %204 = vperm.xlu0 %441, %v192_v4  }
  0x1d   : > { %444 = vset.pattern.permute.xlu1 %v481_v7  ;;  %445 = vset.pattern.permute.xlu0 %v482_v8  ;;  %v487_v7 = vmov 0.0  }
  0x1e   : > { %234 = vperm.xlu1 %444, %v192_v4   ;;  %244 = vperm.xlu0 %445, %v192_v4   ;;  %182 = vst.msk [vmem:[%s176_s25] sm:$0x1] %vm181_vm5, %v487_v7 }
  0x20   : > { %v450_v13 = vpop.eup %449 }
  0x21   : > { %v187_v14 = vadd.f32 1.0, %v450_v13 }
  0x22   : > { %446 = vset.pattern.permute.xlu1 %v483_v9  ;;  %448 = vset.pattern.permute.xlu0 %v478_v1 }
  0x23   : > { %254 = vperm.xlu1 %446, %v192_v4   ;;  %451 = vrcp.f32 %v187_v14 }
  0x25   : > { %v307_v15 = vld [vmem:[%s176_s25] sm:$0x1] }
  0x27   : > { %447 = vset.pattern.permute.xlu1 %v484_v10 }
  0x28   : > { %264 = vperm.xlu1 %447, %v192_v4  }
  0x30   : > { %v452_v22 = vpop.eup %451 }
  0x31   : > { %v201_v23 = vrot.slane %v452_v22, %v200_v17  ;;  %v210_v25 = vrot.slane %v452_v22, %v209_v18  ;;  %v220_v27 = vrot.slane %v452_v22, %v219_v19  ;;  %v230_v32 = vrot.slane %v452_v22, %v229_v24 }
  0x32   : > { %v240_v34 = vrot.slane %v452_v22, %v239_v26  ;;  %v250_v37 = vrot.slane %v452_v22, %v249_v30  ;;  %v260_v46 = vrot.slane %v452_v22, %v259_v38  ;;  %v270_v52 = vrot.slane %v452_v22, %v269_v47 }
  0x8f   : > { %v215_v20 = vpop.permute.xlu1 %214  ;;  %v196_v21 = vpop.permute.xlu0 %195 }
  0x90   : > { %v202_v31 = vmul.f32 %v201_v23, %v196_v21  ;;  %v221_v35 = vmul.f32 %v220_v27, %v215_v20 }
  0x94   : > { %v225_v28 = vpop.permute.xlu1 %224  ;;  %v205_v29 = vpop.permute.xlu0 %204 }
  0x95   : > { %v211_v33 = vmul.f32 %v210_v25, %v205_v29  ;;  %v231_v39 = vmul.f32 %v230_v32, %v225_v28 }
  0x97   : > { %v212_v36 = vadd.f32 %v211_v33, %v202_v31 }
  0x99   : > { %v222_v40 = vadd.f32 %v221_v35, %v212_v36  ;;  %v235_v41 = vpop.permute.xlu1 %234  ;;  %v245_v42 = vpop.permute.xlu0 %244 }
  0x9a   : > { %v241_v43 = vmul.f32 %v240_v34, %v235_v41  ;;  %v251_v45 = vmul.f32 %v250_v37, %v245_v42 }
  0x9b   : > { %v232_v44 = vadd.f32 %v231_v39, %v222_v40 }
  0x9d   : > { %v242_v48 = vadd.f32 %v241_v43, %v232_v44 }
  0x9e   : > { %v255_v49 = vpop.permute.xlu1 %254 }
  0x9f   : > { %v252_v50 = vadd.f32 %v251_v45, %v242_v48  ;;  %v261_v51 = vmul.f32 %v260_v46, %v255_v49 }
  0xa1   : > { %v262_v54 = vadd.f32 %v261_v51, %v252_v50 }
  0xa3   : > { %v265_v53 = vpop.permute.xlu1 %264 }
  0xa4   : > { %v271_v55 = vmul.f32 %v270_v52, %v265_v53 }
  0xa6   : > { %v272_v56 = vadd.f32 %v271_v55, %v262_v54 }
  0xa8   : > { %274 = vrot.lane.b32.xlu0 %v272_v56, %s485_s21 }
  0xac   : > { %286 = vperm.xlu0 %448, %v283_v57  }
  0xb0   : > { %295 = vrot.lane.b32.xlu0 %v272_v56, %s486_s22 }
 0x11a   : > { %v275_v58 = vpop.permute.xlu0 %274 }
 0x11b   : > { %v276_v59 = vsel %vm273_vm0, %v275_v58, %v272_v56 }
 0x11c   : > { %277 = vrot.lane.b32.xlu1 %v276_v59, %s485_s21 }
 0x127   : > { %v287_v60 = vpop.permute.xlu0 %286 }
 0x12b   : > { %v296_v61 = vpop.permute.xlu0 %295 }
 0x12c   : > { %299 = vst.msk [vmem:[#allocation2] sm:$0xff] %vm298_vm1, %v296_v61 }
 0x18e   : > { %v278_v62 = vpop.permute.xlu1 %277 }
 0x18f   : > { %v279_v63 = vsel %vm273_vm0, %v278_v62, %v272_v56 }
 0x190   : > { %290 = vrot.lane.b32.xlu1 %v279_v63, %s486_s22 }
 0x202   : > { %v291_v1 = vpop.permute.xlu1 %290 }
 0x203   : > { %v293_v2 = vsel %vm282_vm2, %v287_v60, %v291_v1 }
 0x204   : > { %v304_v3 = vsub.f32 %v452_v22, %v293_v2 }
 0x206   : > { %v305_v4 = vmax.f32 %v304_v3, 0.0 }
 0x208   : > { %v306_v5 = vsel %vm303_vm3, %v305_v4, 0.0 }
 0x209   : > { %v309_v6 = vsel %vm308_vm4, %v306_v5, 0.0 }
 0x20a   : > { %310 = vadd.xlane.f32.xlu1 %v309_v6 }
 0x293   : > { %v311_v8 = vpop.xlane.xlu1 %310 }
 0x294   : > { %v312_v9 = vrot.slane %v311_v8, 4 }
 0x296   : > { %v313_v10 = vadd.f32 %v312_v9, %v311_v8 }
 0x298   : > { %v314_v11 = vrot.slane %v313_v10, 2 }
 0x29a   : > { %v315_v12 = vadd.f32 %v314_v11, %v313_v10 }
 0x29c   : > { %v316_v13 = vrot.slane %v315_v12, 1 }
 0x29e   : > { %v317_v14 = vadd.f32 %v316_v13, %v315_v12 }
 0x2a0   : > { %403 = vpush %v317_v14 }
 0x2d1   : > { %s404_s26 = spop %403 }
 0x2d2   : > { %v319_v16 = vstv %s404_s26 }
 0x2d3   : > { %v320_v17 = vadd.f32 %v319_v16, %v307_v15 }
 0x2d5   : > { %322 = vst.msk [vmem:[%s176_s25] sm:$0x1] %vm181_vm5, %v320_v17 }
 0x2d6 PF: > { %s12_s11 = sadd.s32 1, %s475_s11   ;;  %s547_s9 = smov %s471_s10 }
 0x2d7   : > { %p9_p5 = scmp.ge.s32.totalorder %s12_s11, 4   ;;  %s548_s10 = smov %s550_s12 }
 0x2d9   :  { %11 = sbr.rel (!%p9_p5) target bundleno = 2 (0x2), region = 65 }

</bundles_post_ra>
